<compile_context>
chip_gen: v7x
topology: tpu7x:2x2x1
jax: 0.10.0
libtpu: 0.0.40
codegen_flags: <defaults>
</compile_context>

<pallas_src>
import functools

import jax
import jax.numpy as jnp
from jax.experimental import pallas as pl
from jax.experimental.pallas import tpu as pltpu


def _round_up(x, m):
    return (x + m - 1) // m * m


def _cdiv(a, b):
    return (a + b - 1) // b


def _vmem_capacity_bytes():
    """Per-TensorCore VMEM capacity; conservative fallback if the query fails."""
    try:
        cap = int(pltpu.get_tpu_info().vmem_capacity_bytes)
        if cap > 0:
            return cap
    except Exception:
        pass
    return 64 * 1024 * 1024  # v7x per-TC VMEM: safe lower bound for all gens


def _obd_forward_kernel(x_ref, w1_ref, b1_ref, w2_ref, b2_ref, out_ref,
                        acc_ref, *, tf, f_total, need_mask):
    """One (batch-tile, F-tile) grid step of
         sigmoid( relu( x @ W1 + b1 ) @ W2 + b2 ).

    x_ref  : [tn, tf]   f32 input tile (cast to bf16 in-kernel for the MXU)
    w1_ref : [tf, Bp]   bf16 base-classifier weight tile
    b1_ref : [1, Bp]    f32 base-classifier bias
    w2_ref : [Bp, Kp]   bf16 OBD head weight
    b2_ref : [1, Kp]    f32 OBD head bias
    out_ref: [tn, Kp]   bf16 threshold probabilities P(y > q) (lane-dense)
    acc_ref: [tn, Bp]   f32 accumulator over the F (contraction) grid axis
    """
    k = pl.program_id(1)

    @pl.when(k == 0)
    def _init():
        acc_ref[...] = jnp.zeros_like(acc_ref)

    xk = x_ref[...]
    if need_mask:
        # Last F tile overhangs the (unpadded) feature axis: zero the garbage
        # columns so they contribute nothing to the contraction.
        col = jax.lax.broadcasted_iota(jnp.int32, xk.shape, 1)
        xk = jnp.where(col + k * tf < f_total, xk, 0.0)

    # base classifier Linear: bf16 MXU inputs, f32 accumulation.
    acc_ref[...] += jnp.dot(xk.astype(jnp.bfloat16), w1_ref[...],
                            preferred_element_type=jnp.float32)

    @pl.when(k == pl.num_programs(1) - 1)
    def _finalize():
        # OBD head: bias/ReLU in f32, second matmul bf16 on the MXU, f32 acc,
        # sigmoid in f32, store bf16 (lane-dense full `vst`).
        h = jnp.maximum(acc_ref[...] + b1_ref[...], 0.0)
        z = jnp.dot(h.astype(jnp.bfloat16), w2_ref[...],
                    preferred_element_type=jnp.float32) + b2_ref[...]
        out_ref[...] = jax.nn.sigmoid(z).astype(out_ref.dtype)


def obd_ecoc_forward(x_nchw, w1, b1, w2, b2, *, max_batch_tile=2048):
    """OBDECOCModel.forward on TPU via a fused Pallas kernel.

    x_nchw : [N, C, H, W] float32
    w1     : [F, B]  (F = C*H*W, B = base_n_outputs)  -- pre-transposed vs torch
    b1     : [B]
    w2     : [B, K-1]
    b2     : [K-1]
    returns: [N, K-1] threshold probabilities P(y > q), float32
    """
    n = x_nchw.shape[0]
    f = x_nchw.shape[1] * x_nchw.shape[2] * x_nchw.shape[3]
    b = w1.shape[1]
    k1 = w2.shape[1]  # num_classes - 1

    b_pad = _round_up(b, 128)     # hidden width, lane-dense
    out_pad = _round_up(k1, 128)  # output width, lane-dense

    x_flat = x_nchw.reshape(n, f)  # torch.nn.Flatten order; no copy, no cast

    # ---- per-generation VMEM budget (v5e/v6e: 128 MiB, v7x: 64 MiB) ----
    vmem_cap = _vmem_capacity_bytes()
    budget = int(0.8 * vmem_cap)          # ~102 MiB on v5e/v6e, ~51 MiB on v7x

    # ---- F (contraction) tiling: keep W1 blocks comfortably inside VMEM ----
    w1_full_bytes = f * b_pad * 2         # bf16, single-buffered when resident
    if w1_full_bytes <= budget // 2:
        tf, k_tiles = f, 1                # whole contraction in one block
        w1_block_bytes = w1_full_bytes    # Buffered(1): constant index map
    else:
        tf = 512                          # lane-aligned F tile (large-F regime)
        k_tiles = _cdiv(f, tf)
        w1_block_bytes = 2 * tf * b_pad * 2   # double-buffered along k
    f_pad = tf * k_tiles
    need_mask = (k_tiles > 1) and (f % tf != 0)

    # ---- batch tile: biggest multiple of 16 that fits the budget ----
    fixed_bytes = (w1_block_bytes
                   + b_pad * 4                 # b1 (f32)
                   + b_pad * out_pad * 2       # W2 (bf16)
                   + out_pad * 4)              # b2 (f32)
    # per-row: double-buffered f32 x tile + double-buffered bf16 out tile + acc
    per_row = 2 * tf * 4 + 2 * out_pad * 2 + b_pad * 4
    avail = max(budget - fixed_bytes, 16 * per_row)
    fit = max(16, (avail // per_row) // 16 * 16)
    # Prefer >= ~4 batch tiles (keeps both v7x TensorCores fed and the DMA /
    # compute pipeline full) as long as tiles stay >= 512 rows.
    quarter = _round_up(_cdiv(n, 4), 16)
    tn = int(min(max_batch_tile, fit, max(512, quarter), _round_up(n, 16)))
    tn = max(16, tn - tn % 16)
    n_tiles = _cdiv(n, tn)

    # ---- pad + cast the (small) parameters; x streams untouched ----
    w1_p = jnp.zeros((f_pad, b_pad), jnp.bfloat16).at[:f, :b].set(
        w1.astype(jnp.bfloat16))
    b1_p = jnp.zeros((1, b_pad), jnp.float32).at[0, :b].set(
        b1.astype(jnp.float32))
    w2_p = jnp.zeros((b_pad, out_pad), jnp.bfloat16).at[:b, :k1].set(
        w2.astype(jnp.bfloat16))
    b2_p = jnp.zeros((1, out_pad), jnp.float32).at[0, :k1].set(
        b2.astype(jnp.float32))

    # ---- specs: constant-index operands are single-buffered ----
    resident = functools.partial(pl.BlockSpec, pipeline_mode=pl.Buffered(1))
    if k_tiles == 1:
        w1_spec = resident((tf, b_pad), lambda i, k: (0, 0))
    else:
        w1_spec = pl.BlockSpec((tf, b_pad), lambda i, k: (k, 0))
    in_specs = [
        pl.BlockSpec((tn, tf), lambda i, k: (i, k)),        # x: streams (f32)
        w1_spec,                                            # W1 (bf16)
        resident((1, b_pad), lambda i, k: (0, 0)),          # b1
        resident((b_pad, out_pad), lambda i, k: (0, 0)),    # W2 (bf16)
        resident((1, out_pad), lambda i, k: (0, 0)),        # b2
    ]
    out_spec = pl.BlockSpec((tn, out_pad), lambda i, k: (i, 0))

    est_vmem = fixed_bytes + tn * per_row + 4 * 1024 * 1024
    vmem_limit = int(min(vmem_cap - 8 * 1024 * 1024,          # headroom on v7x
                         max(est_vmem, 32 * 1024 * 1024)))

    cost = pl.CostEstimate(
        flops=2 * n_tiles * tn * (f_pad * b_pad + b_pad * out_pad),
        transcendentals=n_tiles * tn * out_pad,
        bytes_accessed=(n * f * 4
                        + w1_p.size * 2 * (n_tiles if k_tiles > 1 else 1)
                        + w2_p.size * 2 + (b_pad + out_pad) * 4
                        + n * out_pad * 2),
    )

    kernel = functools.partial(_obd_forward_kernel, tf=tf, f_total=f,
                               need_mask=need_mask)

    out_padded = pl.pallas_call(
        kernel,
        out_shape=jax.ShapeDtypeStruct((n, out_pad), jnp.bfloat16),
        grid_spec=pltpu.PrefetchScalarGridSpec(
            num_scalar_prefetch=0,
            grid=(n_tiles, k_tiles),
            in_specs=in_specs,
            out_specs=out_spec,
            scratch_shapes=[pltpu.VMEM((tn, b_pad), jnp.float32)],
        ),
        compiler_params=pltpu.CompilerParams(
            dimension_semantics=("parallel", "arbitrary"),
            vmem_limit_bytes=vmem_limit,
        ),
        cost_estimate=cost,
    )(x_flat, w1_p, b1_p, w2_p, b2_p)

    # Slice away lane padding and return f32; both fuse into the surrounding
    # jit, so the padded bf16 array is never re-streamed through HBM twice.
    return out_padded[:, :k1].astype(jnp.float32)


# TODO(synk): predict_from_inputs (ECOC cdist scores / softmax / argmax) is not
# part of forward(); it is left to plain JAX if ever needed.


if __name__ == "__main__":
    # Small deterministic setup consistent with the module:
    #   num_classes = 5  -> OBD head produces num_classes - 1 = 4 outputs
    #   base_n_outputs = 32
    #   base_classifier = Flatten + Linear(C*H*W -> 32)
    num_classes = 5
    base_n_outputs = 32
    N, C, H, W = 2, 4, 16, 16
    F = C * H * W

    key = jax.random.PRNGKey(0)
    kx, kw1, kb1, kw2, kb2 = jax.random.split(key, 5)

    x = jax.random.normal(kx, (N, C, H, W), dtype=jnp.float32)

    # Deterministic parameter init (uniform, roughly matching nn.Linear scale).
    lim1 = 1.0 / jnp.sqrt(F)
    w1 = jax.random.uniform(kw1, (F, base_n_outputs), jnp.float32, -lim1, lim1)
    b1 = jax.random.uniform(kb1, (base_n_outputs,), jnp.float32, -lim1, lim1)

    lim2 = 1.0 / jnp.sqrt(base_n_outputs)
    w2 = jax.random.uniform(kw2, (base_n_outputs, num_classes - 1),
                            jnp.float32, -lim2, lim2)
    b2 = jax.random.uniform(kb2, (num_classes - 1,), jnp.float32, -lim2, lim2)

    fwd = jax.jit(obd_ecoc_forward)   # slice/cast epilogue fuses into the jit
    out = jax.block_until_ready(fwd(x, w1, b1, w2, b2))

    # Pure-JAX reference mirroring the kernel's numerics (bf16 MXU inputs,
    # f32 accumulation, f32 bias/ReLU/sigmoid epilogue, bf16 output rounding
    # absorbed by the tolerance).
    x_flat = x.reshape(N, F)
    h_ref = jnp.maximum(
        jnp.dot(x_flat.astype(jnp.bfloat16).astype(jnp.float32),
                w1.astype(jnp.bfloat16).astype(jnp.float32),
                precision=jax.lax.Precision.HIGHEST) + b1, 0.0)
    ref = jax.nn.sigmoid(
        jnp.dot(h_ref.astype(jnp.bfloat16).astype(jnp.float32),
                w2.astype(jnp.bfloat16).astype(jnp.float32),
                precision=jax.lax.Precision.HIGHEST) + b2)

    assert out.shape == (N, num_classes - 1)
    assert jnp.allclose(out, ref, atol=5e-3, rtol=5e-3), (
        float(jnp.max(jnp.abs(out - ref))))

    print("KERNEL_OK")
</pallas_src>

<mosaic_0001>
module attributes {stable_mosaic.version = 11 : i64} {
  func.func @_obd_forward_kernel(%arg0: i32, %arg1: i32, %arg2: memref<16x1024xf32, #tpu.memory_space<vmem>>, %arg3: memref<1024x128xbf16, #tpu.memory_space<vmem>>, %arg4: memref<1x128xf32, #tpu.memory_space<vmem>>, %arg5: memref<128x128xbf16, #tpu.memory_space<vmem>>, %arg6: memref<1x128xf32, #tpu.memory_space<vmem>>, %arg7: memref<16x128xbf16, #tpu.memory_space<vmem>>, %arg8: memref<16x128xf32, #tpu.memory_space<vmem>>) attributes {dimension_semantics = [#tpu.dimension_semantics<parallel>, #tpu.dimension_semantics<arbitrary>], iteration_bounds = array<i64: 1, 1>, scalar_prefetch = 0 : i64, scratch_operands = 1 : i64, tpu.core_type = #tpu.core_type<tc>, window_params = [{transform_indices = @transform_0, window_bounds = array<i64: 16, 1024>}, {pipeline_mode = #tpu.pipeline_mode<synchronous>, transform_indices = @transform_1, window_bounds = array<i64: 1024, 128>}, {pipeline_mode = #tpu.pipeline_mode<synchronous>, transform_indices = @transform_2, window_bounds = array<i64: 1, 128>}, {pipeline_mode = #tpu.pipeline_mode<synchronous>, transform_indices = @transform_3, window_bounds = array<i64: 128, 128>}, {pipeline_mode = #tpu.pipeline_mode<synchronous>, transform_indices = @transform_4, window_bounds = array<i64: 1, 128>}, {transform_indices = @transform_5, window_bounds = array<i64: 16, 128>}]} {
    %c0_i32 = arith.constant 0 : i32
    %0 = arith.cmpi eq, %arg1, %c0_i32 : i32
    %1 = arith.extui %0 : i1 to i32
    %c0_i32_0 = arith.constant 0 : i32
    %2 = arith.cmpi ne, %1, %c0_i32_0 : i32
    scf.if %2 {
      %cst_10 = arith.constant 0.000000e+00 : f32
      %13 = vector.broadcast %cst_10 : f32 to vector<16x128xf32>
      %c0_11 = arith.constant 0 : index
      %c0_12 = arith.constant 0 : index
      %14 = vector.load %arg8[%c0_11, %c0_12] : memref<16x128xf32, #tpu.memory_space<vmem>>, vector<16x128xf32>
      tpu.vector_store %arg8[%c0_11, %c0_12], %13 {strides = array<i32>} : memref<16x128xf32, #tpu.memory_space<vmem>>, vector<16x128xf32>,
    } else {
    }
    %c0 = arith.constant 0 : index
    %c0_1 = arith.constant 0 : index
    %3 = vector.load %arg2[%c0, %c0_1] : memref<16x1024xf32, #tpu.memory_space<vmem>>, vector<16x1024xf32>
    %c0_2 = arith.constant 0 : index
    %c0_3 = arith.constant 0 : index
    %4 = vector.load %arg8[%c0_2, %c0_3] : memref<16x128xf32, #tpu.memory_space<vmem>>, vector<16x128xf32>
    %5 = arith.truncf %3 : vector<16x1024xf32> to vector<16x1024xbf16>
    %c0_4 = arith.constant 0 : index
    %c0_5 = arith.constant 0 : index
    %6 = vector.load %arg3[%c0_4, %c0_5] : memref<1024x128xbf16, #tpu.memory_space<vmem>>, vector<1024x128xbf16>
    %cst = arith.constant dense<0.000000e+00> : vector<16x128xf32>
    %7 = tpu.matmul %5, %6, %cst {dimension_numbers = #tpu.dot_dimension_numbers<[1], [0], [0], [1], [0, 0, 1, 1], [], []>} : vector<16x1024xbf16>, vector<1024x128xbf16>, vector<16x128xf32> -> vector<16x128xf32>
    %8 = arith.addf %4, %7 : vector<16x128xf32>
    %c0_6 = arith.constant 0 : index
    %c0_7 = arith.constant 0 : index
    %9 = vector.load %arg8[%c0_6, %c0_7] : memref<16x128xf32, #tpu.memory_space<vmem>>, vector<16x128xf32>
    tpu.vector_store %arg8[%c0_6, %c0_7], %8 {strides = array<i32>} : memref<16x128xf32, #tpu.memory_space<vmem>>, vector<16x128xf32>,
    %c0_i32_8 = arith.constant 0 : i32
    %10 = arith.cmpi eq, %arg1, %c0_i32_8 : i32
    %11 = arith.extui %10 : i1 to i32
    %c0_i32_9 = arith.constant 0 : i32
    %12 = arith.cmpi ne, %11, %c0_i32_9 : i32
    scf.if %12 {
      %c0_10 = arith.constant 0 : index
      %c0_11 = arith.constant 0 : index
      %13 = vector.load %arg8[%c0_10, %c0_11] : memref<16x128xf32, #tpu.memory_space<vmem>>, vector<16x128xf32>
      %c0_12 = arith.constant 0 : index
      %c0_13 = arith.constant 0 : index
      %14 = vector.load %arg4[%c0_12, %c0_13] : memref<1x128xf32, #tpu.memory_space<vmem>>, vector<1x128xf32>
      %15 = vector.broadcast %14 : vector<1x128xf32> to vector<16x128xf32>
      %16 = arith.addf %13, %15 : vector<16x128xf32>
      %cst_14 = arith.constant 0.000000e+00 : f32
      %17 = vector.broadcast %cst_14 : f32 to vector<16x128xf32>
      %18 = arith.maximumf %16, %17 : vector<16x128xf32>
      %19 = arith.truncf %18 : vector<16x128xf32> to vector<16x128xbf16>
      %c0_15 = arith.constant 0 : index
      %c0_16 = arith.constant 0 : index
      %20 = vector.load %arg5[%c0_15, %c0_16] : memref<128x128xbf16, #tpu.memory_space<vmem>>, vector<128x128xbf16>
      %cst_17 = arith.constant dense<0.000000e+00> : vector<16x128xf32>
      %21 = tpu.matmul %19, %20, %cst_17 {dimension_numbers = #tpu.dot_dimension_numbers<[1], [0], [0], [1], [0, 0, 1, 1], [], []>} : vector<16x128xbf16>, vector<128x128xbf16>, vector<16x128xf32> -> vector<16x128xf32>
      %c0_18 = arith.constant 0 : index
      %c0_19 = arith.constant 0 : index
      %22 = vector.load %arg6[%c0_18, %c0_19] : memref<1x128xf32, #tpu.memory_space<vmem>>, vector<1x128xf32>
      %23 = vector.broadcast %22 : vector<1x128xf32> to vector<16x128xf32>
      %24 = arith.addf %21, %23 : vector<16x128xf32>
      %25 = arith.negf %24 : vector<16x128xf32>
      %26 = math.exp %25 : vector<16x128xf32>
      %cst_20 = arith.constant 1.000000e+00 : f32
      %27 = vector.broadcast %cst_20 : f32 to vector<16x128xf32>
      %28 = arith.addf %27, %26 : vector<16x128xf32>
      %29 = arith.divf %27, %28 : vector<16x128xf32>
      %30 = arith.truncf %29 : vector<16x128xf32> to vector<16x128xbf16>
      %c0_21 = arith.constant 0 : index
      %c0_22 = arith.constant 0 : index
      %31 = vector.load %arg7[%c0_21, %c0_22] : memref<16x128xbf16, #tpu.memory_space<vmem>>, vector<16x128xbf16>
      tpu.vector_store %arg7[%c0_21, %c0_22], %30 {strides = array<i32>} : memref<16x128xbf16, #tpu.memory_space<vmem>>, vector<16x128xbf16>,
    } else {
    }
    return
  }
  func.func @transform_0(%arg0: i32, %arg1: i32) -> (i32, i32) {
    %c0_i32 = arith.constant 0 : i32
    return %arg0, %arg1 : i32, i32
  }
  func.func @transform_1(%arg0: i32, %arg1: i32) -> (i32, i32) {
    %c0_i32 = arith.constant 0 : i32
    %c0_i32_0 = arith.constant 0 : i32
    %c0_i32_1 = arith.constant 0 : i32
    return %c0_i32, %c0_i32_0 : i32, i32
  }
  func.func @transform_2(%arg0: i32, %arg1: i32) -> (i32, i32) {
    %c0_i32 = arith.constant 0 : i32
    %c0_i32_0 = arith.constant 0 : i32
    %c0_i32_1 = arith.constant 0 : i32
    return %c0_i32, %c0_i32_0 : i32, i32
  }
  func.func @transform_3(%arg0: i32, %arg1: i32) -> (i32, i32) {
    %c0_i32 = arith.constant 0 : i32
    %c0_i32_0 = arith.constant 0 : i32
    %c0_i32_1 = arith.constant 0 : i32
    return %c0_i32, %c0_i32_0 : i32, i32
  }
  func.func @transform_4(%arg0: i32, %arg1: i32) -> (i32, i32) {
    %c0_i32 = arith.constant 0 : i32
    %c0_i32_0 = arith.constant 0 : i32
    %c0_i32_1 = arith.constant 0 : i32
    return %c0_i32, %c0_i32_0 : i32, i32
  }
  func.func @transform_5(%arg0: i32, %arg1: i32) -> (i32, i32) {
    %c0_i32 = arith.constant 0 : i32
    %c0_i32_0 = arith.constant 0 : i32
    return %arg0, %c0_i32 : i32, i32
  }
}

</mosaic_0001>

<bundles_post_ra>
// kernel: obd_ecoc_forward.1
= control target key start
LH: loop header
LB: loop body
LE: loop exit
PB: predicated region body
PF: predicated region fallthrough
CT: control target
= control target key end

     0   :  { %v68_v30 = vlaneseq  ;;  %v1462_v33 = vmov 1983009808   ;;  %vm1464_vm0 = vmmov 0   ;;  %s1791_s0 = inlined_call_operand.vmem [shape: f32[2,1024], index: 0, kind: input, shape index: {}]   ;;  %s1792_s1 = inlined_call_operand.vmem [shape: bf16[1024,128], index: 1, kind: input, shape index: {}]   ;;  %s1793_s2 = inlined_call_operand.vmem [shape: f32[1,128], index: 2, kind: input, shape index: {}]   ;;  %s1794_s3 = inlined_call_operand.vmem [shape: bf16[128,128], index: 3, kind: input, shape index: {}]   ;;  %s1795_s4 = inlined_call_operand.vmem [shape: f32[1,128], index: 4, kind: input, shape index: {}]   ;;  %s1796_s5 = inlined_call_operand.vmem [shape: bf16[2,128], index: 5, kind: output, shape index: {}]  }
   0x1   :  { %v1358_v0 = vld [vmem:[%s1792_s1 + $0x40] sm:$0xff]   ;;  %v1362_v4 = vld [vmem:[%s1792_s1 + $0x48] sm:$0xff]   ;;  %v1366_v8 = vld [vmem:[%s1792_s1 + $0x50] sm:$0xff]   ;;  %v66_v34 = vunpack.c.l.s4 %v1462_v33 }
   0x2   :  { %v1359_v1 = vld [vmem:[%s1792_s1 + $0xc0] sm:$0xff]   ;;  %1237 = vmatprep.subr.bf16.mxu0 %v1358_v0  ;;  %v1363_v5 = vld [vmem:[%s1792_s1 + $0xc8] sm:$0xff]   ;;  %v1367_v9 = vld [vmem:[%s1792_s1 + $0xd0] sm:$0xff]   ;;  %v1592_v35 = vshrl.u32 %v68_v30, 7 }
   0x3   :  { %v1360_v2 = vld [vmem:[%s1792_s1] sm:$0xff]   ;;  %1259 = vmatprep.subr.bf16.mxu1 %v1359_v1  ;;  %v1364_v6 = vld [vmem:[%s1792_s1 + $0x8] sm:$0xff]   ;;  %v1368_v10 = vld [vmem:[%s1792_s1 + $0x10] sm:$0xff]   ;;  %v67_v38 = vunpack.c.0.s8 %v66_v34 }
   0x4   :  { %v1361_v3 = vld [vmem:[%s1792_s1 + $0x80] sm:$0xff]   ;;  %1238 = vmatpush3.bf16.msra.mxu0 %v1360_v2  ;;  %v1365_v7 = vld [vmem:[%s1792_s1 + $0x88] sm:$0xff]   ;;  %v1369_v11 = vld [vmem:[%s1792_s1 + $0x90] sm:$0xff]  }
   0x5   :  { %1260 = vmatpush3.bf16.msra.mxu1 %v1361_v3  ;;  %1239 = vmatprep.subr.bf16.mxu0 %v1362_v4  ;;  %v1370_v12 = vld [vmem:[%s1792_s1 + $0x58] sm:$0xff]   ;;  %v1374_v16 = vld [vmem:[%s1792_s1 + $0x60] sm:$0xff]   ;;  %v1378_v20 = vld [vmem:[%s1792_s1 + $0x68] sm:$0xff]   ;;  %v1616_v44 = vsub.s32 %v67_v38, %v1592_v35 }
   0x6   :  { %1261 = vmatprep.subr.bf16.mxu1 %v1363_v5  ;;  %v1371_v13 = vld [vmem:[%s1792_s1 + $0xd8] sm:$0xff]   ;;  %v1375_v17 = vld [vmem:[%s1792_s1 + $0xe0] sm:$0xff]   ;;  %v1379_v21 = vld [vmem:[%s1792_s1 + $0xe8] sm:$0xff]  }
   0x7   :  { %v1372_v14 = vld [vmem:[%s1792_s1 + $0x18] sm:$0xff]   ;;  %v1376_v18 = vld [vmem:[%s1792_s1 + $0x20] sm:$0xff]   ;;  %v1380_v22 = vld [vmem:[%s1792_s1 + $0x28] sm:$0xff]  }
   0x8   :  { %1240 = vmatpush3.bf16.msra.mxu0 %v1364_v6  ;;  %v1373_v15 = vld [vmem:[%s1792_s1 + $0x98] sm:$0xff]   ;;  %v1377_v19 = vld [vmem:[%s1792_s1 + $0xa0] sm:$0xff]   ;;  %v1381_v23 = vld [vmem:[%s1792_s1 + $0xa8] sm:$0xff]  }
   0x9   :  { %1262 = vmatpush3.bf16.msra.mxu1 %v1365_v7  ;;  %1241 = vmatprep.subr.bf16.mxu0 %v1366_v8  ;;  %v1382_v24 = vld [vmem:[%s1792_s1 + $0x70] sm:$0xff]   ;;  %v1386_v28 = vld [vmem:[%s1792_s1 + $0x78] sm:$0xff]   ;;  %v1402_v46 = vld [vmem:[%s1792_s1 + $0x140] sm:$0xff]  }
   0xa   :  { %1263 = vmatprep.subr.bf16.mxu1 %v1367_v9  ;;  %v1383_v25 = vld [vmem:[%s1792_s1 + $0xf0] sm:$0xff]   ;;  %v1387_v29 = vld [vmem:[%s1792_s1 + $0xf8] sm:$0xff]   ;;  %v1403_v51 = vld [vmem:[%s1792_s1 + $0x1c0] sm:$0xff]  }
   0xb   :  { %v1384_v26 = vld [vmem:[%s1792_s1 + $0x30] sm:$0xff]   ;;  %v1388_v31 = vld [vmem:[%s1792_s1 + $0x38] sm:$0xff]   ;;  %v1404_v60 = vld [vmem:[%s1792_s1 + $0x100] sm:$0xff]  }
   0xc   :  { %1242 = vmatpush3.bf16.msra.mxu0 %v1368_v10  ;;  %v1385_v27 = vld [vmem:[%s1792_s1 + $0xb0] sm:$0xff]   ;;  %v1389_v32 = vld [vmem:[%s1792_s1 + $0xb8] sm:$0xff]   ;;  %v1405_v1 = vld [vmem:[%s1792_s1 + $0x180] sm:$0xff]  }
   0xd   :  { %1264 = vmatpush3.bf16.msra.mxu1 %v1369_v11  ;;  %1243 = vmatprep.subr.bf16.mxu0 %v1370_v12  ;;  %v1390_v36 = vld [vmem:[%s1791_s0] ss:$16 sps:$4 sm:$0xff]   ;;  %v1398_v41 = vld [vmem:[%s1791_s0 + $0x4] ss:$16 sps:$4 sm:$0xff]   ;;  %v1406_v4 = vld [vmem:[%s1792_s1 + $0x148] sm:$0xff]  }
   0xe   :  { %1265 = vmatprep.subr.bf16.mxu1 %v1371_v13  ;;  %v1392_v37 = vld [vmem:[%s1791_s0 + $0x20] ss:$16 sps:$4 sm:$0xff]   ;;  %v1399_v42 = vld [vmem:[%s1791_s0 + $0x24] ss:$16 sps:$4 sm:$0xff]   ;;  %v71_v47 = vrot.slane %v1390_v36, %v1616_v44  ;;  %v78_v52 = vrot.slane %v1398_v41, %v1616_v44  ;;  %v1407_v7 = vld [vmem:[%s1792_s1 + $0x1c8] sm:$0xff]  }
   0xf   :  { %v1394_v39 = vld [vmem:[%s1791_s0 + $0x40] ss:$16 sps:$4 sm:$0xff]   ;;  %v1400_v43 = vld [vmem:[%s1791_s0 + $0x44] ss:$16 sps:$4 sm:$0xff]   ;;  %v85_v48 = vrot.slane %v1392_v37, %v1616_v44  ;;  %v92_v53 = vrot.slane %v1399_v42, %v1616_v44  ;;  %v1408_v8 = vld [vmem:[%s1792_s1 + $0x108] sm:$0xff]  }
  0x10   :  { %1244 = vmatpush3.bf16.msra.mxu0 %v1372_v14  ;;  %v1396_v40 = vld [vmem:[%s1791_s0 + $0x60] ss:$16 sps:$4 sm:$0xff]   ;;  %v1401_v45 = vld [vmem:[%s1791_s0 + $0x64] ss:$16 sps:$4 sm:$0xff]   ;;  %v143_v49 = vrot.slane %v1394_v39, %v1616_v44  ;;  %v150_v54 = vrot.slane %v1400_v43, %v1616_v44  ;;  %v1409_v9 = vld [vmem:[%s1792_s1 + $0x188] sm:$0xff]  }
  0x11   :  { %1266 = vmatpush3.bf16.msra.mxu1 %v1373_v15  ;;  %1245 = vmatprep.subr.bf16.mxu0 %v1374_v16  ;;  %v157_v50 = vrot.slane %v1396_v40, %v1616_v44  ;;  %v164_v55 = vrot.slane %v1401_v45, %v1616_v44  ;;  %v94_v56 = vcombine.high %v71_v47, %v85_v48  ;;  %v1410_v10 = vld [vmem:[%s1792_s1 + $0x150] sm:$0xff]   ;;  %v1414_v14 = vld [vmem:[%s1792_s1 + $0x158] sm:$0xff]  }
  0x12   :  { %1267 = vmatprep.subr.bf16.mxu1 %v1375_v17  ;;  %v93_v58 = vcombine.low %v71_v47, %v85_v48  ;;  %v96_v61 = vcombine.high %v78_v52, %v92_v53  ;;  %v95_v63 = vcombine.low %v78_v52, %v92_v53  ;;  %v1411_v11 = vld [vmem:[%s1792_s1 + $0x1d0] sm:$0xff]   ;;  %v1415_v15 = vld [vmem:[%s1792_s1 + $0x1d8] sm:$0xff]  }
  0x13   :  { %v166_v57 = vcombine.high %v143_v49, %v157_v50  ;;  %v165_v59 = vcombine.low %v143_v49, %v157_v50  ;;  %v168_v62 = vcombine.high %v150_v54, %v164_v55  ;;  %v167_v0 = vcombine.low %v150_v54, %v164_v55  ;;  %v1412_v12 = vld [vmem:[%s1792_s1 + $0x110] sm:$0xff]   ;;  %v1416_v16 = vld [vmem:[%s1792_s1 + $0x118] sm:$0xff]  }
  0x14   :  { %1246 = vmatpush3.bf16.msra.mxu0 %v1376_v18  ;;  %v1413_v13 = vld [vmem:[%s1792_s1 + $0x190] sm:$0xff]   ;;  %v1417_v17 = vld [vmem:[%s1792_s1 + $0x198] sm:$0xff]   ;;  %v1418_v18 = vld [vmem:[%s1792_s1 + $0x160] sm:$0xff]  }
  0x15   :  { %1268 = vmatpush3.bf16.msra.mxu1 %v1377_v19  ;;  %1247 = vmatprep.subr.bf16.mxu0 %v1378_v20  ;;  %v222_v2 = vpack.c.bf16 %v166_v57, %v94_v56  ;;  %v221_v3 = vpack.c.bf16 %v165_v59, %v93_v58  ;;  %v224_v5 = vpack.c.bf16 %v168_v62, %v96_v61  ;;  %v1419_v19 = vld [vmem:[%s1792_s1 + $0x1e0] sm:$0xff]   ;;  %v1430_v30 = vld [vmem:[%s1792_s1 + $0x178] sm:$0xff]  }
  0x16   :  { %1269 = vmatprep.subr.bf16.mxu1 %v1379_v21  ;;  %v223_v6 = vpack.c.bf16 %v167_v0, %v95_v63  ;;  %v1420_v20 = vld [vmem:[%s1792_s1 + $0x120] sm:$0xff]   ;;  %v1433_v33 = vld [vmem:[%s1792_s1 + $0x1b8] sm:$0xff]  }
  0x17   :  { %773 = vmatprep.mubr.bf16.mxu0 %v222_v2  ;;  %814 = vmatprep.mubr.bf16.mxu1 %v224_v5  ;;  %v1421_v21 = vld [vmem:[%s1792_s1 + $0x1a0] sm:$0xff]   ;;  %v1434_v34 = vld [vmem:[%s1791_s0 + $0x8] ss:$16 sps:$4 sm:$0xff]   ;;  %v1442_v39 = vld [vmem:[%s1791_s0 + $0xc] ss:$16 sps:$4 sm:$0xff]  }
  0x18   :  { %1248 = vmatpush3.bf16.msra.mxu0 %v1380_v22  ;;  %v1422_v22 = vld [vmem:[%s1792_s1 + $0x168] sm:$0xff]   ;;  %v107_v41 = vrot.slane %v1434_v34, %v1616_v44  ;;  %v114_v48 = vrot.slane %v1442_v39, %v1616_v44  ;;  %v1446_v0 = vld [vmem:[%s1794_s3] sm:$0xff]   ;;  %v1448_v2 = vld [vmem:[%s1794_s3 + $0x10] sm:$0xff]  }
  0x19   :  { %1270 = vmatpush3.bf16.msra.mxu1 %v1381_v23  ;;  %1249 = vmatprep.subr.bf16.mxu0 %v1382_v24  ;;  %v1423_v23 = vld [vmem:[%s1792_s1 + $0x1e8] sm:$0xff]   ;;  %v1220_v34 = vld [vmem:[%s1793_s2] ss:$0 sm:$0xff] }
  0x1a   :  { %1271 = vmatprep.subr.bf16.mxu1 %v1383_v25  ;;  %v1424_v24 = vld [vmem:[%s1792_s1 + $0x128] sm:$0xff]  }
  0x1b   :  { %v1425_v25 = vld [vmem:[%s1792_s1 + $0x1a8] sm:$0xff]  }
  0x1c   :  { %1250 = vmatpush3.bf16.msra.mxu0 %v1384_v26  ;;  %v1426_v26 = vld [vmem:[%s1792_s1 + $0x170] sm:$0xff]   ;;  %v1436_v36 = vld [vmem:[%s1791_s0 + $0x28] ss:$16 sps:$4 sm:$0xff]   ;;  %v1443_v40 = vld [vmem:[%s1791_s0 + $0x2c] ss:$16 sps:$4 sm:$0xff]  }
  0x1d   :  { %1272 = vmatpush3.bf16.msra.mxu1 %v1385_v27  ;;  %1251 = vmatprep.subr.bf16.mxu0 %v1386_v28  ;;  %v1427_v27 = vld [vmem:[%s1792_s1 + $0x1f0] sm:$0xff]   ;;  %v1438_v37 = vld [vmem:[%s1791_s0 + $0x48] ss:$16 sps:$4 sm:$0xff]   ;;  %v121_v42 = vrot.slane %v1436_v36, %v1616_v44  ;;  %v1444_v45 = vld [vmem:[%s1791_s0 + $0x4c] ss:$16 sps:$4 sm:$0xff]   ;;  %v128_v49 = vrot.slane %v1443_v40, %v1616_v44 }
  0x1e   :  { %1273 = vmatprep.subr.bf16.mxu1 %v1387_v29  ;;  %v1428_v28 = vld [vmem:[%s1792_s1 + $0x130] sm:$0xff]   ;;  %v1440_v38 = vld [vmem:[%s1791_s0 + $0x68] ss:$16 sps:$4 sm:$0xff]   ;;  %v179_v43 = vrot.slane %v1438_v37, %v1616_v44 }
  0x1f   :  { %v1429_v29 = vld [vmem:[%s1792_s1 + $0x1b0] sm:$0xff]   ;;  %v193_v47 = vrot.slane %v1440_v38, %v1616_v44  ;;  %v130_v50 = vcombine.high %v107_v41, %v121_v42  ;;  %v129_v53 = vcombine.low %v107_v41, %v121_v42  ;;  %v132_v55 = vcombine.high %v114_v48, %v128_v49  ;;  %v1451_v5 = vld [vmem:[%s1794_s3 + $0x28] sm:$0xff]  }
  0x20   :  { %1252 = vmatpush3.bf16.msra.mxu0 %v1388_v31  ;;  %v1431_v31 = vld [vmem:[%s1792_s1 + $0x1f8] sm:$0xff]   ;;  %v131_v57 = vcombine.low %v114_v48, %v128_v49 }
  0x21   :  { %1274 = vmatpush3.bf16.msra.mxu1 %v1389_v32  ;;  %1281 = vmatprep.subr.bf16.mxu0 %v1402_v46  ;;  %v1432_v32 = vld [vmem:[%s1792_s1 + $0x138] sm:$0xff]   ;;  %v202_v54 = vcombine.high %v179_v43, %v193_v47  ;;  %v201_v56 = vcombine.low %v179_v43, %v193_v47 }
  0x22   :  { %1303 = vmatprep.subr.bf16.mxu1 %v1403_v51  ;;  %v1445_v46 = vld [vmem:[%s1791_s0 + $0x6c] ss:$16 sps:$4 sm:$0xff]   ;;  %v186_v51 = vrot.slane %v1444_v45, %v1616_v44 }
  0x23   :  { %774 = vmatmul.mubr.bf16.vlgmr.msra.gmra.mrb[0].mxu0 %v221_v3  ;;  %v200_v52 = vrot.slane %v1445_v46, %v1616_v44  ;;  %v225_v61 = vpack.c.bf16 %v201_v56, %v129_v53  ;;  %v1463_v44 = vmov 0.0   ;;  %v1449_v3 = vld [vmem:[%s1794_s3 + $0x18] sm:$0xff]   ;;  %v1221_v46 = vld [vmem:[%s1795_s4] ss:$0 sm:$0xff] }
  0x24   :  { %815 = vmatmul.mubr.bf16.vlgmr.msra.gmra.mrb[0].mxu1 %v223_v6  ;;  %1282 = vmatpush3.bf16.msra.mxu0 %v1404_v60  ;;  %v226_v60 = vpack.c.bf16 %v202_v54, %v130_v50  ;;  %v1452_v6 = vld [vmem:[%s1794_s3 + $0x30] sm:$0xff]  }
  0x25   :  { %1304 = vmatpush3.bf16.msra.mxu1 %v1405_v1  ;;  %1283 = vmatprep.subr.bf16.mxu0 %v1406_v4  ;;  %v204_v58 = vcombine.high %v186_v51, %v200_v52  ;;  %v203_v59 = vcombine.low %v186_v51, %v200_v52  ;;  %v1447_v1 = vld [vmem:[%s1794_s3 + $0x8] sm:$0xff]   ;;  %v1450_v4 = vld [vmem:[%s1794_s3 + $0x20] sm:$0xff]  }
  0x26   :  { %1305 = vmatprep.subr.bf16.mxu1 %v1407_v7  ;;  %855 = vmatprep.mubr.bf16.mxu0 %v226_v60  ;;  %v1453_v7 = vld [vmem:[%s1794_s3 + $0x38] sm:$0xff]  }
  0x27   :  { %v228_v62 = vpack.c.bf16 %v204_v58, %v132_v55  ;;  %v227_v63 = vpack.c.bf16 %v203_v59, %v131_v57  ;;  %v1465_v59 = vmov 1966171168  }
  0x28   :  { %1284 = vmatpush3.bf16.msra.mxu0 %v1408_v8  ;;  %v1054_v60 = vunpack.c.l.s4 %v1465_v59 }
  0x29   :  { %1306 = vmatpush3.bf16.msra.mxu1 %v1409_v9  ;;  %1285 = vmatprep.subr.bf16.mxu0 %v1410_v10 }
  0x2a   :  { %1307 = vmatprep.subr.bf16.mxu1 %v1411_v11  ;;  %896 = vmatprep.mubr.bf16.mxu1 %v228_v62 }
  0x2c   :  { %1286 = vmatpush3.bf16.msra.mxu0 %v1412_v12 }
  0x2d   :  { %1308 = vmatpush3.bf16.msra.mxu1 %v1413_v13  ;;  %1287 = vmatprep.subr.bf16.mxu0 %v1414_v14 }
  0x2e   :  { %1309 = vmatprep.subr.bf16.mxu1 %v1415_v15 }
  0x30   :  { %1288 = vmatpush3.bf16.msra.mxu0 %v1416_v16 }
  0x31   :  { %1310 = vmatpush3.bf16.msra.mxu1 %v1417_v17  ;;  %1289 = vmatprep.subr.bf16.mxu0 %v1418_v18 }
  0x32   :  { %1311 = vmatprep.subr.bf16.mxu1 %v1419_v19 }
  0x34   :  { %1290 = vmatpush3.bf16.msra.mxu0 %v1420_v20 }
  0x35   :  { %1312 = vmatpush3.bf16.msra.mxu1 %v1421_v21  ;;  %1291 = vmatprep.subr.bf16.mxu0 %v1422_v22 }
  0x36   :  { %1313 = vmatprep.subr.bf16.mxu1 %v1423_v23 }
  0x38   :  { %1292 = vmatpush3.bf16.msra.mxu0 %v1424_v24 }
  0x39   :  { %1314 = vmatpush3.bf16.msra.mxu1 %v1425_v25  ;;  %1293 = vmatprep.subr.bf16.mxu0 %v1426_v26 }
  0x3a   :  { %1315 = vmatprep.subr.bf16.mxu1 %v1427_v27 }
  0x3c   :  { %1294 = vmatpush3.bf16.msra.mxu0 %v1428_v28 }
  0x3d   :  { %1316 = vmatpush3.bf16.msra.mxu1 %v1429_v29  ;;  %1295 = vmatprep.subr.bf16.mxu0 %v1430_v30 }
  0x3e   :  { %1317 = vmatprep.subr.bf16.mxu1 %v1431_v31 }
  0x40   :  { %1296 = vmatpush3.bf16.msra.mxu0 %v1432_v32 }
  0x41   :  { %1318 = vmatpush3.bf16.msra.mxu1 %v1433_v33  ;;  %1334 = vmatprep.subr.bf16.mxu0 %v1463_v44 }
  0x43   :  { %856 = vmatmul.mubr.bf16.vlgmr.msra.gmra.mrb[4].mxu0 %v225_v61  ;;  %v1055_v61 = vunpack.c.0.s8 %v1054_v60 }
  0x44   :  { %897 = vmatmul.mubr.bf16.vlgmr.msra.gmra.mrb[4].mxu1 %v227_v63  ;;  %1335 = vmatpush3.bf16.msra.mxu0 %v1446_v0 }
  0x45   :  { %1336 = vmatprep.subr.bf16.mxu0 %v1463_v44  ;;  %1350 = vmatprep.mubr.msk.bf16.mxu0 %vm1464_vm0, %v1463_v44  ;;  %v1058_v63 = vsub.s32 %v1055_v61, %v1592_v35 }
  0x48   :  { %1337 = vmatpush3.bf16.msra.mxu0 %v1447_v1 }
  0x49   :  { %1338 = vmatprep.subr.bf16.mxu0 %v1463_v44 }
  0x4c   :  { %1339 = vmatpush3.bf16.msra.mxu0 %v1448_v2 }
  0x4d   :  { %1340 = vmatprep.subr.bf16.mxu0 %v1463_v44 }
  0x50   :  { %1341 = vmatpush3.bf16.msra.mxu0 %v1449_v3 }
  0x51   :  { %1342 = vmatprep.subr.bf16.mxu0 %v1463_v44 }
  0x54   :  { %1343 = vmatpush3.bf16.msra.mxu0 %v1450_v4 }
  0x55   :  { %1344 = vmatprep.subr.bf16.mxu0 %v1463_v44 }
  0x58   :  { %1345 = vmatpush3.bf16.msra.mxu0 %v1451_v5 }
  0x59   :  { %1346 = vmatprep.subr.bf16.mxu0 %v1463_v44 }
  0x5c   :  { %1347 = vmatpush3.bf16.msra.mxu0 %v1452_v6 }
  0x5d   :  { %1348 = vmatprep.subr.bf16.mxu0 %v1463_v44 }
  0x60   :  { %1349 = vmatpush3.bf16.msra.mxu0 %v1453_v7 }
  0xf6   :  { %v1253_v8 = vpop.f32.mrb[0].mxu0 }
  0xf7   :  { %v1275_v9 = vpop.f32.mrb[0].mxu1  ;;  %v1254_v10 = vpop.f32.mrb[1].mxu0 }
  0xf8   :  { %v1255_v11 = vadd.f32 %v1254_v10, %v1253_v8  ;;  %v1276_v12 = vpop.f32.mrb[1].mxu1  ;;  %v1256_v13 = vpop.f32.mrb[2].mxu0 }
  0xf9   :  { %v1277_v14 = vadd.f32 %v1276_v12, %v1275_v9  ;;  %v1278_v15 = vpop.f32.mrb[2].mxu1  ;;  %v1257_v16 = vpop.f32.mrb[3].mxu0 }
  0xfa   :  { %v1258_v17 = vadd.f32 %v1257_v16, %v1256_v13  ;;  %v1279_v18 = vpop.f32.mrb[3].mxu1 }
  0xfb   :  { %v817_v19 = vadd.f32 %v1277_v14, %v1255_v11  ;;  %v1280_v20 = vadd.f32 %v1279_v18, %v1278_v15 }
  0xfd   :  { %v820_v21 = vadd.f32 %v1280_v20, %v1258_v17 }
 0x116   :  { %v1297_v22 = vpop.f32.mrb[4].mxu0 }
 0x117   :  { %v1319_v23 = vpop.f32.mrb[4].mxu1  ;;  %v1298_v24 = vpop.f32.mrb[5].mxu0 }
 0x118   :  { %v1299_v25 = vadd.f32 %v1298_v24, %v1297_v22  ;;  %v1320_v26 = vpop.f32.mrb[5].mxu1  ;;  %v1300_v27 = vpop.f32.mrb[6].mxu0 }
 0x119   :  { %v1321_v28 = vadd.f32 %v1320_v26, %v1319_v23  ;;  %v1322_v29 = vpop.f32.mrb[6].mxu1  ;;  %v1301_v30 = vpop.f32.mrb[7].mxu0 }
 0x11a   :  { %v858_v31 = vadd.f32 %v1299_v25, %v817_v19  ;;  %v1302_v32 = vadd.f32 %v1301_v30, %v1300_v27  ;;  %v1323_v33 = vpop.f32.mrb[7].mxu1 }
 0x11b   :  { %v1324_v36 = vadd.f32 %v1323_v33, %v1322_v29 }
 0x11c   :  { %v899_v37 = vadd.f32 %v1321_v28, %v858_v31  ;;  %v861_v38 = vadd.f32 %v1302_v32, %v820_v21 }
 0x11e   :  { %v921_v39 = vadd.f32 %v1220_v34, %v899_v37  ;;  %v902_v40 = vadd.f32 %v1324_v36, %v861_v38 }
 0x120   :  { %v922_v41 = vadd.f32 %v1220_v34, %v902_v40  ;;  %v923_v42 = vmax.f32 %v921_v39, 0.0 }
 0x122   :  { %v924_v43 = vmax.f32 %v922_v41, 0.0 }
 0x124   :  { %v925_v45 = vpack.c.bf16 %v924_v43, %v923_v42 }
 0x126   :  { %1351 = vmatmul.mubr.bf16.vlgmr.msra.gmra.mrb[8].mxu0 %v925_v45 }
 0x1f9   :  { %v1031_v47 = vpop.f32.mrb[8].mxu0 }
 0x1fa   :  { %v1032_v48 = vadd.f32 %v1221_v46, %v1031_v47  ;;  %v1352_v49 = vpop.f32.mrb[9].mxu0 }
 0x1fb   :  { %v1034_v50 = vpop.f32.mrb[10].mxu0 }
 0x1fc   :  { %v1230_v51 = vmul.f32 -1.442695, %v1032_v48  ;;  %v1035_v52 = vadd.f32 %v1221_v46, %v1034_v50  ;;  %v1353_v53 = vpop.f32.mrb[11].mxu0 }
 0x1fe   :  { %1454 = vpow2.f32 %v1230_v51  ;;  %v1231_v54 = vmul.f32 -1.442695, %v1035_v52 }
 0x200   :  { %1456 = vpow2.f32 %v1231_v54 }
 0x208   :  { %v1455_v55 = vpop.eup %1454 }
 0x209   :  { %v1044_v56 = vadd.f32 1.0, %v1455_v55 }
 0x20a   :  { %v1457_v57 = vpop.eup %1456 }
 0x20b   :  { %v1045_v58 = vadd.f32 1.0, %v1457_v57  ;;  %1458 = vrcp.f32 %v1044_v56 }
 0x20d   :  { %1460 = vrcp.f32 %v1045_v58 }
 0x215   :  { %v1459_v62 = vpop.eup %1458 }
 0x217   :  { %v1461_v0 = vpop.eup %1460 }
 0x218   :  { %v1050_v44 = vpack.c.bf16 %v1461_v0, %v1459_v62 }
 0x21a   :  { %v1059_v1 = vrot.slane %v1050_v44, %v1058_v63 }
 0x21c   :  { %1233 = vst.sshfl [vmem:[#allocation3] sm:$0x1 pattern:$0x73625140] %v1059_v1 }
 0x223   :  { %v1134_v2 = vld [vmem:[#allocation3] sm:$0x1] }
 0x224   :  { %1135 = vst [vmem:[%s1796_s5] sm:$0x1] %v1134_v2 }

</bundles_post_ra>
